<compile_context>
chip_gen: v7x
topology: tpu7x:2x2x1
jax: 0.10.0
libtpu: 0.0.40
codegen_flags: <defaults>
</compile_context>

<pallas_src>
import jax
import jax.numpy as jnp
from jax import lax
from jax.experimental import pallas as pl
from jax.experimental.pallas import tpu as pltpu

BN_EPS = 1e-5
NORM_EPS = 1e-12  # F.normalize default eps


# --------------------------------------------------------------------------------------
# Kernels
# --------------------------------------------------------------------------------------
def _stats_kernel(n_ref, x_ref, w1_ref, h_ref, stats_ref):
    """h = x @ w1 (MXU, bf16 in / f32 acc); stash h (bf16); masked per-tile sum / sumsq."""
    t = pl.program_id(0)
    tb = x_ref.shape[0]

    h = jnp.dot(x_ref[...].astype(jnp.bfloat16), w1_ref[...],
                preferred_element_type=jnp.float32)
    h_ref[...] = h.astype(jnp.bfloat16)

    # Mask rows beyond the true batch size (ragged last tile); n_ref is an SMEM scalar.
    row = t * tb + lax.broadcasted_iota(jnp.int32, (tb, 1), 0)
    hm = jnp.where(row < n_ref[0], h, 0.0)
    s = jnp.sum(hm, axis=0, keepdims=True)         # (1, H)
    ss = jnp.sum(hm * hm, axis=0, keepdims=True)   # (1, H)
    stats_ref[...] = jnp.concatenate([s, ss], axis=0)[None]   # (1, 2, H)


def _apply_kernel(h_ref, ss_ref, w2_ref, o_ref):
    """Folded BN + ReLU + second matmul (MXU) + abs + L2-normalize (rsqrt on EUP)."""
    ssv = ss_ref[...]                      # (2, H) f32: row 0 = scale, row 1 = shift
    scale = ssv[0:1, :]
    shift = ssv[1:2, :]
    a = jnp.maximum(h_ref[...].astype(jnp.float32) * scale + shift, 0.0)
    y = jnp.dot(a.astype(jnp.bfloat16), w2_ref[...],
                preferred_element_type=jnp.float32)
    y = jnp.abs(y)
    sq = jnp.sum(y * y, axis=1, keepdims=True)
    inv = lax.rsqrt(jnp.maximum(sq, NORM_EPS * NORM_EPS))
    o_ref[...] = (y * inv).astype(o_ref.dtype)


# --------------------------------------------------------------------------------------
# Wrapper
# --------------------------------------------------------------------------------------
def _round_up(v, m):
    return (v + m - 1) // m * m


def _pick_batch_tile(B):
    """16-row aligned tiles (bf16 sublane packing); prefer 256-512 for large batches."""
    if B > 512:
        return 512
    return max(16, _round_up(B, 16))


def _vmem_limit_bytes():
    try:
        cap = int(pltpu.get_tpu_info().vmem_capacity_bytes)
    except Exception:
        cap = 128 * 1024 * 1024
    # ~96 MiB on 128 MiB parts (v5e/v6e), ~48 MiB on 64 MiB parts (v7x).
    return min(100 * 1024 * 1024, cap * 3 // 4)


def projection_head(x, w1, gamma, beta, w2, *, batch_tile=None):
    """x: (B, Din); w1: (Din, H) bf16; gamma/beta: (H,) f32; w2: (H, Dout) bf16.

    Linear-1's bias is intentionally absent: training-mode BatchNorm subtracts the batch
    mean, which cancels any per-feature constant bias exactly.  Linear-2 has bias=False.
    """
    B, Din = x.shape
    H = w1.shape[1]
    Dout = w2.shape[1]

    # No-op when init_params is used (weights already bf16); avoids per-call full-weight casts.
    if w1.dtype != jnp.bfloat16:
        w1 = w1.astype(jnp.bfloat16)
    if w2.dtype != jnp.bfloat16:
        w2 = w2.astype(jnp.bfloat16)

    TB = batch_tile if batch_tile is not None else _pick_batch_tile(B)
    assert TB % 16 == 0, "batch tile must be a multiple of 16 (bf16 sublane packing)"
    n_tiles = pl.cdiv(B, TB)
    B_pad = n_tiles * TB
    n_valid = jnp.array([B], jnp.int32)
    vmem_limit = _vmem_limit_bytes()

    def run(buffered):
        def inv_spec(shape, index_map):
            # Block-invariant operands: a single VMEM buffer is enough (no double-buffering).
            if buffered:
                return pl.BlockSpec(shape, index_map, pipeline_mode=pl.Buffered(1))
            return pl.BlockSpec(shape, index_map)

        # ---- pass 1: h = x @ w1, per-tile batch statistics (fully parallel over tiles) ----
        h, tile_stats = pl.pallas_call(
            _stats_kernel,
            out_shape=(jax.ShapeDtypeStruct((B_pad, H), jnp.bfloat16),
                       jax.ShapeDtypeStruct((n_tiles, 2, H), jnp.float32)),
            grid=(n_tiles,),
            in_specs=[
                pl.BlockSpec(memory_space=pltpu.MemorySpace.SMEM),   # true batch size (scalar)
                pl.BlockSpec((TB, Din), lambda t: (t, 0)),           # x tile (cast in-kernel)
                inv_spec((Din, H), lambda t: (0, 0)),                # w1 (block-invariant)
            ],
            out_specs=(
                pl.BlockSpec((TB, H), lambda t: (t, 0)),             # h stash (bf16)
                pl.BlockSpec((1, 2, H), lambda t: (t, 0, 0)),        # per-tile sum / sumsq
            ),
            compiler_params=pltpu.CompilerParams(
                dimension_semantics=("parallel",),
                vmem_limit_bytes=vmem_limit,
            ),
        )(n_valid, x, w1)

        # ---- tiny XLA combine (H elements): fold stats + gamma/beta into scale/shift ----
        sums = jnp.sum(tile_stats, axis=0)                       # (2, H)
        mean = sums[0] / B
        var = jnp.maximum(sums[1] / B - mean * mean, 0.0)        # biased (train-mode) variance
        scale = gamma.astype(jnp.float32) * lax.rsqrt(var + BN_EPS)
        shift = beta.astype(jnp.float32) - mean * scale
        scale_shift = jnp.stack([scale, shift], axis=0)          # (2, H) f32

        # ---- pass 2: folded BN + ReLU + Linear2 + abs + L2 normalize (parallel) ----
        out = pl.pallas_call(
            _apply_kernel,
            out_shape=jax.ShapeDtypeStruct((B, Dout), jnp.float32),
            grid=(n_tiles,),
            in_specs=[
                pl.BlockSpec((TB, H), lambda t: (t, 0)),             # h tile
                inv_spec((2, H), lambda t: (0, 0)),                  # folded BN scale/shift
                inv_spec((H, Dout), lambda t: (0, 0)),               # w2 (block-invariant)
            ],
            out_specs=pl.BlockSpec((TB, Dout), lambda t: (t, 0)),
            compiler_params=pltpu.CompilerParams(
                dimension_semantics=("parallel",),
                vmem_limit_bytes=vmem_limit,
            ),
        )(h, scale_shift, w2)
        return out

    try:
        return run(buffered=True)
    except Exception:
        # pl.Buffered(1) (single-buffer invariant operands) unsupported on this JAX build;
        # fall back to default double-buffered specs (correctness identical).
        return run(buffered=False)


# --------------------------------------------------------------------------------------
# Params / reference / test
# --------------------------------------------------------------------------------------
def init_params(key, input_dim, hidden_dim, output_dim):
    """PyTorch-default-range init; weights pre-transposed and stored in bf16 (MXU feed).
    Linear-1 bias is not materialized: training-mode BN cancels it exactly."""
    k1, k2 = jax.random.split(key, 2)
    bound1 = 1.0 / jnp.sqrt(input_dim)
    bound2 = 1.0 / jnp.sqrt(hidden_dim)
    w1 = jax.random.uniform(k1, (input_dim, hidden_dim), jnp.float32, -bound1, bound1)
    w2 = jax.random.uniform(k2, (hidden_dim, output_dim), jnp.float32, -bound2, bound2)
    gamma = jnp.ones((hidden_dim,), jnp.float32)   # BN weight
    beta = jnp.zeros((hidden_dim,), jnp.float32)   # BN bias
    return w1.astype(jnp.bfloat16), gamma, beta, w2.astype(jnp.bfloat16)


def reference(x, w1, gamma, beta, w2):
    """Pure-JAX f32 reference: training-mode BN (biased variance), matching the module."""
    h = x @ w1.astype(jnp.float32)
    mean = jnp.mean(h, axis=0, keepdims=True)
    var = jnp.mean((h - mean) ** 2, axis=0, keepdims=True)
    h = (h - mean) / jnp.sqrt(var + BN_EPS) * gamma + beta
    h = jnp.maximum(h, 0.0)
    y = jnp.abs(h @ w2.astype(jnp.float32))
    n = jnp.sqrt(jnp.sum(y * y, axis=1, keepdims=True))
    return y / jnp.maximum(n, NORM_EPS)


if __name__ == "__main__":
    # Small shapes consistent with the module (defaults 1280/1280/128, scaled down).
    INPUT_DIM, HIDDEN_DIM, OUTPUT_DIM = 256, 256, 128

    key = jax.random.PRNGKey(0)
    kx, kp = jax.random.split(key)
    w1, gamma, beta, w2 = init_params(kp, INPUT_DIM, HIDDEN_DIM, OUTPUT_DIM)

    def check(B, batch_tile=None):
        x = jax.random.normal(jax.random.fold_in(kx, B), (B, INPUT_DIM), jnp.float32)
        out = jax.block_until_ready(
            projection_head(x, w1, gamma, beta, w2, batch_tile=batch_tile))
        ref = reference(x, w1, gamma, beta, w2)
        row_norms = jnp.sqrt(jnp.sum(out * out, axis=1))
        assert out.shape == (B, OUTPUT_DIM)
        assert bool(jnp.all(out >= 0.0))
        assert bool(jnp.allclose(row_norms, 1.0, atol=1e-4))
        # Loose tolerance: bf16 MXU operands (f32 accumulation) and one-pass batch stats.
        assert bool(jnp.allclose(out, ref, atol=5e-2))

    check(64)                   # divisible batch: single tile
    check(40, batch_tile=16)    # ragged batch: pl.cdiv grid + masked last tile
    print("KERNEL_OK")
</pallas_src>

<mosaic_0001>
module attributes {stable_mosaic.version = 11 : i64} {
  func.func @_stats_kernel(%arg0: i32, %arg1: memref<1xi32, #tpu.memory_space<smem>>, %arg2: memref<64x256xf32, #tpu.memory_space<vmem>>, %arg3: memref<256x256xbf16, #tpu.memory_space<vmem>>, %arg4: memref<64x256xbf16, #tpu.memory_space<vmem>>, %arg5: memref<1x2x256xf32, #tpu.memory_space<vmem>>) attributes {dimension_semantics = [#tpu.dimension_semantics<parallel>], iteration_bounds = array<i64: 1>, scalar_prefetch = 0 : i64, scratch_operands = 0 : i64, tpu.core_type = #tpu.core_type<tc>, window_params = [{transform_indices = @transform_0, window_bounds = array<i64: 1>}, {transform_indices = @transform_1, window_bounds = array<i64: 64, 256>}, {pipeline_mode = #tpu.pipeline_mode<synchronous>, transform_indices = @transform_2, window_bounds = array<i64: 256, 256>}, {transform_indices = @transform_3, window_bounds = array<i64: 64, 256>}, {transform_indices = @transform_4, window_bounds = array<i64: 1, 2, 256>}]} {
    %c0 = arith.constant 0 : index
    %c0_0 = arith.constant 0 : index
    %0 = vector.load %arg2[%c0, %c0_0] : memref<64x256xf32, #tpu.memory_space<vmem>>, vector<64x256xf32>
    %1 = arith.truncf %0 : vector<64x256xf32> to vector<64x256xbf16>
    %c0_1 = arith.constant 0 : index
    %c0_2 = arith.constant 0 : index
    %2 = vector.load %arg3[%c0_1, %c0_2] : memref<256x256xbf16, #tpu.memory_space<vmem>>, vector<256x256xbf16>
    %cst = arith.constant dense<0.000000e+00> : vector<64x256xf32>
    %3 = tpu.matmul %1, %2, %cst {dimension_numbers = #tpu.dot_dimension_numbers<[1], [0], [0], [1], [0, 0, 1, 1], [], []>} : vector<64x256xbf16>, vector<256x256xbf16>, vector<64x256xf32> -> vector<64x256xf32>
    %4 = arith.truncf %3 : vector<64x256xf32> to vector<64x256xbf16>
    %c0_3 = arith.constant 0 : index
    %c0_4 = arith.constant 0 : index
    %5 = vector.load %arg4[%c0_3, %c0_4] : memref<64x256xbf16, #tpu.memory_space<vmem>>, vector<64x256xbf16>
    tpu.vector_store %arg4[%c0_3, %c0_4], %4 {strides = array<i32>} : memref<64x256xbf16, #tpu.memory_space<vmem>>, vector<64x256xbf16>,
    %c64_i32 = arith.constant 64 : i32
    %6 = arith.muli %arg0, %c64_i32 : i32
    %7 = tpu.iota {dimensions = array<i32: 0>} : vector<64x1xi32>
    %8 = vector.broadcast %6 : i32 to vector<64x1xi32>
    %9 = arith.addi %8, %7 : vector<64x1xi32>
    %c0_5 = arith.constant 0 : index
    %10 = memref.load %arg1[%c0_5] : memref<1xi32, #tpu.memory_space<smem>>
    %11 = vector.broadcast %10 : i32 to vector<64x1xi32>
    %12 = arith.cmpi slt, %9, %11 : vector<64x1xi32>
    %cst_6 = arith.constant 0.000000e+00 : f32
    %13 = vector.shape_cast %12 : vector<64x1xi1> to vector<64x1xi1>
    %14 = vector.broadcast %13 : vector<64x1xi1> to vector<64x256xi1>
    %15 = vector.broadcast %cst_6 : f32 to vector<64x256xf32>
    %16 = arith.select %14, %3, %15 : vector<64x256xi1>, vector<64x256xf32>
    %cst_7 = arith.constant dense<0.000000e+00> : vector<256xf32>
    %17 = vector.multi_reduction <add>, %16, %cst_7 [0] : vector<64x256xf32> to vector<256xf32>
    %18 = vector.shape_cast %17 : vector<256xf32> to vector<1x256xf32>
    %19 = arith.mulf %16, %16 : vector<64x256xf32>
    %cst_8 = arith.constant dense<0.000000e+00> : vector<256xf32>
    %20 = vector.multi_reduction <add>, %19, %cst_8 [0] : vector<64x256xf32> to vector<256xf32>
    %21 = vector.shape_cast %20 : vector<256xf32> to vector<1x256xf32>
    %22 = tpu.concatenate %18, %21 in 0 : vector<1x256xf32>, vector<1x256xf32> -> vector<2x256xf32>
    %23 = vector.shape_cast %22 : vector<2x256xf32> to vector<1x2x256xf32>
    %c0_9 = arith.constant 0 : index
    %c0_10 = arith.constant 0 : index
    %c0_11 = arith.constant 0 : index
    %24 = vector.load %arg5[%c0_9, %c0_10, %c0_11] : memref<1x2x256xf32, #tpu.memory_space<vmem>>, vector<1x2x256xf32>
    tpu.vector_store %arg5[%c0_9, %c0_10, %c0_11], %23 {strides = array<i32>} : memref<1x2x256xf32, #tpu.memory_space<vmem>>, vector<1x2x256xf32>,
    return
  }
  func.func @transform_0(%arg0: i32) -> i32 {
    %c0_i32 = arith.constant 0 : i32
    %c0_i32_0 = arith.constant 0 : i32
    return %c0_i32 : i32
  }
  func.func @transform_1(%arg0: i32) -> (i32, i32) {
    %c0_i32 = arith.constant 0 : i32
    %c0_i32_0 = arith.constant 0 : i32
    return %arg0, %c0_i32 : i32, i32
  }
  func.func @transform_2(%arg0: i32) -> (i32, i32) {
    %c0_i32 = arith.constant 0 : i32
    %c0_i32_0 = arith.constant 0 : i32
    %c0_i32_1 = arith.constant 0 : i32
    return %c0_i32, %c0_i32_0 : i32, i32
  }
  func.func @transform_3(%arg0: i32) -> (i32, i32) {
    %c0_i32 = arith.constant 0 : i32
    %c0_i32_0 = arith.constant 0 : i32
    return %arg0, %c0_i32 : i32, i32
  }
  func.func @transform_4(%arg0: i32) -> (i32, i32, i32) {
    %c0_i32 = arith.constant 0 : i32
    %c0_i32_0 = arith.constant 0 : i32
    %c0_i32_1 = arith.constant 0 : i32
    return %arg0, %c0_i32, %c0_i32_0 : i32, i32, i32
  }
}

module attributes {stable_mosaic.version = 11 : i64} {
  func.func @_stats_kernel(%arg0: i32, %arg1: memref<1xi32, #tpu.memory_space<smem>>, %arg2: memref<64x256xf32, #tpu.memory_space<vmem>>, %arg3: memref<256x256xbf16, #tpu.memory_space<vmem>>, %arg4: memref<64x256xbf16, #tpu.memory_space<vmem>>, %arg5: memref<1x2x256xf32, #tpu.memory_space<vmem>>) attributes {dimension_semantics = [#tpu.dimension_semantics<parallel>], iteration_bounds = array<i64: 1>, scalar_prefetch = 0 : i64, scratch_operands = 0 : i64, tpu.core_type = #tpu.core_type<tc>, window_params = [{transform_indices = @transform_0, window_bounds = array<i64: 1>}, {transform_indices = @transform_1, window_bounds = array<i64: 64, 256>}, {pipeline_mode = #tpu.pipeline_mode<synchronous>, transform_indices = @transform_2, window_bounds = array<i64: 256, 256>}, {transform_indices = @transform_3, window_bounds = array<i64: 64, 256>}, {transform_indices = @transform_4, window_bounds = array<i64: 1, 2, 256>}]} {
    %c0 = arith.constant 0 : index
    %c0_0 = arith.constant 0 : index
    %0 = vector.load %arg2[%c0, %c0_0] : memref<64x256xf32, #tpu.memory_space<vmem>>, vector<64x256xf32>
    %1 = arith.truncf %0 : vector<64x256xf32> to vector<64x256xbf16>
    %c0_1 = arith.constant 0 : index
    %c0_2 = arith.constant 0 : index
    %2 = vector.load %arg3[%c0_1, %c0_2] : memref<256x256xbf16, #tpu.memory_space<vmem>>, vector<256x256xbf16>
    %cst = arith.constant dense<0.000000e+00> : vector<64x256xf32>
    %3 = tpu.matmul %1, %2, %cst {dimension_numbers = #tpu.dot_dimension_numbers<[1], [0], [0], [1], [0, 0, 1, 1], [], []>} : vector<64x256xbf16>, vector<256x256xbf16>, vector<64x256xf32> -> vector<64x256xf32>
    %4 = arith.truncf %3 : vector<64x256xf32> to vector<64x256xbf16>
    %c0_3 = arith.constant 0 : index
    %c0_4 = arith.constant 0 : index
    %5 = vector.load %arg4[%c0_3, %c0_4] : memref<64x256xbf16, #tpu.memory_space<vmem>>, vector<64x256xbf16>
    tpu.vector_store %arg4[%c0_3, %c0_4], %4 {strides = array<i32>} : memref<64x256xbf16, #tpu.memory_space<vmem>>, vector<64x256xbf16>,
    %c64_i32 = arith.constant 64 : i32
    %6 = arith.muli %arg0, %c64_i32 : i32
    %7 = tpu.iota {dimensions = array<i32: 0>} : vector<64x1xi32>
    %8 = vector.broadcast %6 : i32 to vector<64x1xi32>
    %9 = arith.addi %8, %7 : vector<64x1xi32>
    %c0_5 = arith.constant 0 : index
    %10 = memref.load %arg1[%c0_5] : memref<1xi32, #tpu.memory_space<smem>>
    %11 = vector.broadcast %10 : i32 to vector<64x1xi32>
    %12 = arith.cmpi slt, %9, %11 : vector<64x1xi32>
    %cst_6 = arith.constant 0.000000e+00 : f32
    %13 = vector.shape_cast %12 : vector<64x1xi1> to vector<64x1xi1>
    %14 = vector.broadcast %13 : vector<64x1xi1> to vector<64x256xi1>
    %15 = vector.broadcast %cst_6 : f32 to vector<64x256xf32>
    %16 = arith.select %14, %3, %15 : vector<64x256xi1>, vector<64x256xf32>
    %cst_7 = arith.constant dense<0.000000e+00> : vector<256xf32>
    %17 = vector.multi_reduction <add>, %16, %cst_7 [0] : vector<64x256xf32> to vector<256xf32>
    %18 = vector.shape_cast %17 : vector<256xf32> to vector<1x256xf32>
    %19 = arith.mulf %16, %16 : vector<64x256xf32>
    %cst_8 = arith.constant dense<0.000000e+00> : vector<256xf32>
    %20 = vector.multi_reduction <add>, %19, %cst_8 [0] : vector<64x256xf32> to vector<256xf32>
    %21 = vector.shape_cast %20 : vector<256xf32> to vector<1x256xf32>
    %22 = tpu.concatenate %18, %21 in 0 : vector<1x256xf32>, vector<1x256xf32> -> vector<2x256xf32>
    %23 = vector.shape_cast %22 : vector<2x256xf32> to vector<1x2x256xf32>
    %c0_9 = arith.constant 0 : index
    %c0_10 = arith.constant 0 : index
    %c0_11 = arith.constant 0 : index
    %24 = vector.load %arg5[%c0_9, %c0_10, %c0_11] : memref<1x2x256xf32, #tpu.memory_space<vmem>>, vector<1x2x256xf32>
    tpu.vector_store %arg5[%c0_9, %c0_10, %c0_11], %23 {strides = array<i32>} : memref<1x2x256xf32, #tpu.memory_space<vmem>>, vector<1x2x256xf32>,
    return
  }
  func.func @transform_0(%arg0: i32) -> i32 {
    %c0_i32 = arith.constant 0 : i32
    %c0_i32_0 = arith.constant 0 : i32
    return %c0_i32 : i32
  }
  func.func @transform_1(%arg0: i32) -> (i32, i32) {
    %c0_i32 = arith.constant 0 : i32
    %c0_i32_0 = arith.constant 0 : i32
    return %arg0, %c0_i32 : i32, i32
  }
  func.func @transform_2(%arg0: i32) -> (i32, i32) {
    %c0_i32 = arith.constant 0 : i32
    %c0_i32_0 = arith.constant 0 : i32
    %c0_i32_1 = arith.constant 0 : i32
    return %c0_i32, %c0_i32_0 : i32, i32
  }
  func.func @transform_3(%arg0: i32) -> (i32, i32) {
    %c0_i32 = arith.constant 0 : i32
    %c0_i32_0 = arith.constant 0 : i32
    return %arg0, %c0_i32 : i32, i32
  }
  func.func @transform_4(%arg0: i32) -> (i32, i32, i32) {
    %c0_i32 = arith.constant 0 : i32
    %c0_i32_0 = arith.constant 0 : i32
    %c0_i32_1 = arith.constant 0 : i32
    return %arg0, %c0_i32, %c0_i32_0 : i32, i32, i32
  }
}

</mosaic_0001>

<bundles_post_ra>
// kernel: tpu_custom_call.1
= control target key start
LH: loop header
LB: loop body
LE: loop exit
PB: predicated region body
PF: predicated region fallthrough
CT: control target
= control target key end

     0   :  { %11 = vsyncpa [#allocation4], 0  ;;  %s946_s0 = inlined_call_operand.<no memory space> [shape: s32[1], index: 0, kind: input, shape index: {}]   ;;  %s947_s1 = inlined_call_operand.hbm [shape: f32[64,256], index: 1, kind: input, shape index: {}]   ;;  %s948_s2 = inlined_call_operand.hbm [shape: bf16[256,256], index: 2, kind: input, shape index: {}]   ;;  %s949_s3 = inlined_call_operand.hbm [shape: bf16[64,256], index: 3, kind: output, shape index: {0}]   ;;  %s950_s4 = inlined_call_operand.hbm [shape: f32[1,2,256], index: 4, kind: output, shape index: {1}]  }
   0x1   :  { %12 = vsyncpa [#allocation7], 0 }
   0x2   :  { %13 = vsyncpa [#allocation5], 0 }
   0x3   :  { %14 = vsyncpa [#allocation10], 0  ;;  %s801_s15 = smov [#allocation3]   ;;  %s705_s19 = scalar_lea.hbm %s947_s1, 2048 }
   0x4   :  { %s22_s16 = sshll.u32 %s801_s15, 4  ;;  %p706_p0 = scmp.ne.s32.totalorder %s947_s1, %s705_s19  ;;  %s23_s16 = int_to_ptr.vmem [resolvable:$true] %s22_s16 }
   0x5   :  { %p709_p1 = scmp.lt.u32.totalorder %s705_s19, %s947_s1 }
   0x7   :  { %p711_p2 = pnand %p709_p1, %p706_p0 }
   0x9   :  { %714 = shalt.err (!%p711_p2)
}
   0xa   :  { %s715_s24 = scalar_lea.vmem %s23_s16, 2048  ;;  %p720_p4 = scmp.lt.s32.totalorder %s23_s16, %s23_s16 }
   0xb   :  { %p716_p3 = scmp.ne.s32.totalorder %s23_s16, %s715_s24  ;;  %p721_p5 = scmp.lt.s32.totalorder %s715_s24, %s715_s24 }
   0xd   :  { %p722_p6 = por %p721_p5, %p720_p4 }
   0xf   :  { %p723_p7 = pnand %p722_p6, %p716_p3 }
  0x11   :  { %726 = shalt.err (!%p723_p7)
}
  0x12   :  { %s802_s25 = smov 256   ;;  %s803_s26 = smov 16  }
  0x13   :  { %28 = dma.hbm_to_vmem [thread:$0]  %s947_s1, 2048, %s23_s16, [#allocation4], %s802_s25, %s802_s25, %s803_s26  }
  0x14   :  { %s804_s29 = smov [#allocation6]   ;;  %s727_s7 = scalar_lea.hbm %s948_s2, 4096 }
  0x15   :  { %s34_s30 = sshll.u32 %s804_s29, 4  ;;  %p728_p8 = scmp.ne.s32.totalorder %s948_s2, %s727_s7  ;;  %s35_s30 = int_to_ptr.vmem [resolvable:$true] %s34_s30 }
  0x16   :  { %p731_p9 = scmp.lt.u32.totalorder %s727_s7, %s948_s2 }
  0x18   :  { %p733_p10 = pnand %p731_p9, %p728_p8 }
  0x1a   :  { %736 = shalt.err (!%p733_p10)
}
  0x1b   :  { %s737_s12 = scalar_lea.vmem %s35_s30, 4096  ;;  %p742_p12 = scmp.lt.s32.totalorder %s35_s30, %s35_s30 }
  0x1c   :  { %p738_p11 = scmp.ne.s32.totalorder %s35_s30, %s737_s12  ;;  %p743_p13 = scmp.lt.s32.totalorder %s737_s12, %s737_s12 }
  0x1e   :  { %p744_p0 = por %p743_p13, %p742_p12 }
  0x20   :  { %p745_p1 = pnand %p744_p0, %p738_p11 }
  0x22   :  { %748 = shalt.err (!%p745_p1)
}
  0x23   :  { %s805_s1 = smov 128   ;;  %s806_s13 = smov 8  }
  0x24   :  { %40 = dma.hbm_to_vmem [thread:$0]  %s948_s2, 4096, %s35_s30, [#allocation7], %s805_s1, %s805_s1, %s806_s13  }
  0x25   :  { %793 = dma.done.wait [#allocation4], 2048  }
  0x26   :  { %794 = vsyncadd [#allocation4], 4294965248 }
  0x27   :  { %795 = dma.done.wait [#allocation7], 4096  }
  0x28   :  { %796 = vsyncadd [#allocation7], 4294963200  ;;  %v657_v0 = vld [vmem:[#allocation6 + $0x4] ss:$8 sps:$4 sm:$0xff]   ;;  %v659_v1 = vld [vmem:[#allocation6] ss:$8 sps:$4 sm:$0xff]   ;;  %v393_v56 = vlaneseq  ;;  %v864_v58 = vstv %s946_s0 }
  0x29   :  { %263 = vmatprep.subr.bf16.mxu0 %v657_v0  ;;  %v660_v2 = vld [vmem:[#allocation6 + $0x14] ss:$8 sps:$4 sm:$0xff]   ;;  %617 = vmatprep.subr.bf16.mxu1 %v657_v0  ;;  %v662_v3 = vld [vmem:[#allocation6 + $0x10] ss:$8 sps:$4 sm:$0xff]   ;;  %v663_v4 = vld [vmem:[#allocation6 + $0x24] ss:$8 sps:$4 sm:$0xff]  }
  0x2a   :  { %264 = vmatpush1.bf16.msra.mxu0 %v659_v1  ;;  %633 = vmatpush1.bf16.msra.mxu1 %v659_v1  ;;  %v665_v5 = vld [vmem:[#allocation6 + $0x20] ss:$8 sps:$4 sm:$0xff]   ;;  %v666_v6 = vld [vmem:[#allocation6 + $0x34] ss:$8 sps:$4 sm:$0xff]   ;;  %v668_v7 = vld [vmem:[#allocation6 + $0x30] ss:$8 sps:$4 sm:$0xff]  }
  0x2b   :  { %265 = vmatprep.subr.bf16.mxu0 %v660_v2  ;;  %618 = vmatprep.subr.bf16.mxu1 %v660_v2  ;;  %v669_v8 = vld [vmem:[#allocation6 + $0x44] ss:$8 sps:$4 sm:$0xff]   ;;  %v671_v9 = vld [vmem:[#allocation6 + $0x40] ss:$8 sps:$4 sm:$0xff]   ;;  %v672_v10 = vld [vmem:[#allocation6 + $0x54] ss:$8 sps:$4 sm:$0xff]  }
  0x2c   :  { %v674_v11 = vld [vmem:[#allocation6 + $0x50] ss:$8 sps:$4 sm:$0xff]   ;;  %v675_v12 = vld [vmem:[#allocation6 + $0x64] ss:$8 sps:$4 sm:$0xff]   ;;  %v677_v17 = vld [vmem:[#allocation6 + $0x60] ss:$8 sps:$4 sm:$0xff]  }
  0x2d   :  { %v48_v13 = vld [vmem:[#allocation3 + $0x8] sm:$0xff]  ;;  %v50_v14 = vld [vmem:[#allocation3 + $0x18] sm:$0xff]  ;;  %v47_v38 = vld [vmem:[#allocation3] sm:$0xff]  ;;  %v394_v57 = vshrl.u32 %v393_v56, 7  ;;  %s807_s0 = smov [#allocation8]  }
  0x2e   :  { %266 = vmatpush1.bf16.msra.mxu0 %v662_v3  ;;  %634 = vmatpush1.bf16.msra.mxu1 %v662_v3  ;;  %v64_v15 = vpack.c.bf16 %v50_v14, %v48_v13  ;;  %v56_v16 = vld [vmem:[#allocation3 + $0x48] sm:$0xff]  ;;  %v58_v18 = vld [vmem:[#allocation3 + $0x58] sm:$0xff]  ;;  %v49_v39 = vld [vmem:[#allocation3 + $0x10] sm:$0xff]  ;;  %s541_s17 = sshll.u32 %s807_s0, 4  ;;  %s906_s17 = int_to_ptr.vmem [resolvable:$true] %s541_s17 }
  0x2f   :  { %267 = vmatprep.subr.bf16.mxu0 %v663_v4  ;;  %619 = vmatprep.subr.bf16.mxu1 %v663_v4  ;;  %v678_v19 = vld [vmem:[#allocation6 + $0x74] ss:$8 sps:$4 sm:$0xff]   ;;  %v68_v20 = vpack.c.bf16 %v58_v18, %v56_v16  ;;  %v680_v21 = vld [vmem:[#allocation6 + $0x70] ss:$8 sps:$4 sm:$0xff]   ;;  %v681_v22 = vld [vmem:[#allocation6 + $0x84] ss:$8 sps:$4 sm:$0xff]   ;;  %v63_v46 = vpack.c.bf16 %v49_v39, %v47_v38  ;;  %vm413_vm0 = vcmp.lt.s32.totalorder %v394_v57, %v864_v58  ;;  %p754_p3 = scmp.lt.s32.totalorder %s906_s17, %s906_s17 }
  0x30   :  { %295 = vmatprep.mubr.bf16.mxu0 %v64_v15  ;;  %v683_v23 = vld [vmem:[#allocation6 + $0x80] ss:$8 sps:$4 sm:$0xff]   ;;  %v684_v24 = vld [vmem:[#allocation6 + $0x94] ss:$8 sps:$4 sm:$0xff]   ;;  %v686_v25 = vld [vmem:[#allocation6 + $0x90] ss:$8 sps:$4 sm:$0xff]  }
  0x31   :  { %315 = vmatprep.mubr.bf16.mxu1 %v68_v20  ;;  %v687_v26 = vld [vmem:[#allocation6 + $0xa4] ss:$8 sps:$4 sm:$0xff]   ;;  %v689_v27 = vld [vmem:[#allocation6 + $0xa0] ss:$8 sps:$4 sm:$0xff]   ;;  %v690_v28 = vld [vmem:[#allocation6 + $0xb4] ss:$8 sps:$4 sm:$0xff]  }
  0x32   :  { %268 = vmatpush1.bf16.msra.mxu0 %v665_v5  ;;  %635 = vmatpush1.bf16.msra.mxu1 %v665_v5  ;;  %v692_v29 = vld [vmem:[#allocation6 + $0xb0] ss:$8 sps:$4 sm:$0xff]   ;;  %v693_v30 = vld [vmem:[#allocation6 + $0xc4] ss:$8 sps:$4 sm:$0xff]   ;;  %v695_v31 = vld [vmem:[#allocation6 + $0xc0] ss:$8 sps:$4 sm:$0xff]  }
  0x33   :  { %269 = vmatprep.subr.bf16.mxu0 %v666_v6  ;;  %620 = vmatprep.subr.bf16.mxu1 %v666_v6  ;;  %v696_v32 = vld [vmem:[#allocation6 + $0xd4] ss:$8 sps:$4 sm:$0xff]   ;;  %v698_v33 = vld [vmem:[#allocation6 + $0xd0] ss:$8 sps:$4 sm:$0xff]   ;;  %v699_v34 = vld [vmem:[#allocation6 + $0xe4] ss:$8 sps:$4 sm:$0xff]  }
  0x34   :  { %v701_v35 = vld [vmem:[#allocation6 + $0xe0] ss:$8 sps:$4 sm:$0xff]   ;;  %v702_v36 = vld [vmem:[#allocation6 + $0xf4] ss:$8 sps:$4 sm:$0xff]   ;;  %v704_v37 = vld [vmem:[#allocation6 + $0xf0] ss:$8 sps:$4 sm:$0xff]  }
  0x35   :  { %v55_v40 = vld [vmem:[#allocation3 + $0x40] sm:$0xff]  ;;  %v57_v41 = vld [vmem:[#allocation3 + $0x50] sm:$0xff]  ;;  %v52_v42 = vld [vmem:[#allocation3 + $0x28] sm:$0xff]  ;;  %v395_v59 = vadd.s32 8, %v394_v57  ;;  %v398_v60 = vadd.s32 32, %v394_v57  ;;  %v399_v61 = vadd.s32 40, %v394_v57 }
  0x36   :  { %270 = vmatpush1.bf16.msra.mxu0 %v668_v7  ;;  %636 = vmatpush1.bf16.msra.mxu1 %v668_v7  ;;  %v54_v43 = vld [vmem:[#allocation3 + $0x38] sm:$0xff]  ;;  %v60_v44 = vld [vmem:[#allocation3 + $0x68] sm:$0xff]  ;;  %v67_v47 = vpack.c.bf16 %v57_v41, %v55_v40  ;;  %v51_v50 = vld [vmem:[#allocation3 + $0x20] sm:$0xff]  ;;  %v396_v3 = vadd.s32 16, %v394_v57  ;;  %v874_v15 = vadd.s32 56, %v394_v57  ;;  %s749_s18 = scalar_lea.vmem %s906_s17, 1024 }
  0x37   :  { %271 = vmatprep.subr.bf16.mxu0 %v669_v8  ;;  %621 = vmatprep.subr.bf16.mxu1 %v669_v8  ;;  %v62_v45 = vld [vmem:[#allocation3 + $0x78] sm:$0xff]  ;;  %v66_v48 = vpack.c.bf16 %v54_v43, %v52_v42  ;;  %v53_v51 = vld [vmem:[#allocation3 + $0x30] sm:$0xff]  ;;  %v59_v52 = vld [vmem:[#allocation3 + $0x60] sm:$0xff]  ;;  %vm414_vm1 = vcmp.lt.s32.totalorder %v395_v59, %v864_v58  ;;  %vm417_vm2 = vcmp.lt.s32.totalorder %v398_v60, %v864_v58  ;;  %v397_v8 = vadd.s32 24, %v394_v57  ;;  %p750_p2 = scmp.ne.s32.totalorder %s906_s17, %s749_s18  ;;  %p755_p4 = scmp.lt.s32.totalorder %s749_s18, %s749_s18 }
  0x38   :  { %v70_v49 = vpack.c.bf16 %v62_v45, %v60_v44  ;;  %v61_v53 = vld [vmem:[#allocation3 + $0x70] sm:$0xff]  ;;  %v65_v54 = vpack.c.bf16 %v53_v51, %v51_v50  ;;  %vm418_vm3 = vcmp.lt.s32.totalorder %v399_v61, %v864_v58  ;;  %vm415_vm4 = vcmp.lt.s32.totalorder %v396_v3, %v864_v58 }
  0x39   :  { %v69_v55 = vpack.c.bf16 %v61_v53, %v59_v52  ;;  %vm416_vm5 = vcmp.lt.s32.totalorder %v397_v8, %v864_v58  ;;  %vm420_vm7 = vcmp.lt.s32.totalorder %v874_v15, %v864_v58  ;;  %p756_p5 = por %p755_p4, %p754_p3 }
  0x3a   :  { %272 = vmatpush1.bf16.msra.mxu0 %v671_v9  ;;  %637 = vmatpush1.bf16.msra.mxu1 %v671_v9  ;;  %v870_v9 = vadd.s32 48, %v394_v57 }
  0x3b   :  { %273 = vmatprep.subr.bf16.mxu0 %v672_v10  ;;  %622 = vmatprep.subr.bf16.mxu1 %v672_v10  ;;  %p757_p6 = pnand %p756_p5, %p750_p2 }
  0x3c   :  { %vm419_vm6 = vcmp.lt.s32.totalorder %v870_v9, %v864_v58 }
  0x3e   :  { %274 = vmatpush1.bf16.msra.mxu0 %v674_v11  ;;  %638 = vmatpush1.bf16.msra.mxu1 %v674_v11 }
  0x3f   :  { %275 = vmatprep.subr.bf16.mxu0 %v675_v12  ;;  %623 = vmatprep.subr.bf16.mxu1 %v675_v12 }
  0x42   :  { %276 = vmatpush1.bf16.msra.mxu0 %v677_v17  ;;  %639 = vmatpush1.bf16.msra.mxu1 %v677_v17 }
  0x43   :  { %277 = vmatprep.subr.bf16.mxu0 %v678_v19  ;;  %624 = vmatprep.subr.bf16.mxu1 %v678_v19 }
  0x46   :  { %278 = vmatpush1.bf16.msra.mxu0 %v680_v21  ;;  %640 = vmatpush1.bf16.msra.mxu1 %v680_v21 }
  0x47   :  { %279 = vmatprep.subr.bf16.mxu0 %v681_v22  ;;  %625 = vmatprep.subr.bf16.mxu1 %v681_v22 }
  0x4a   :  { %280 = vmatpush1.bf16.msra.mxu0 %v683_v23  ;;  %641 = vmatpush1.bf16.msra.mxu1 %v683_v23 }
  0x4b   :  { %281 = vmatprep.subr.bf16.mxu0 %v684_v24  ;;  %626 = vmatprep.subr.bf16.mxu1 %v684_v24 }
  0x4e   :  { %282 = vmatpush1.bf16.msra.mxu0 %v686_v25  ;;  %642 = vmatpush1.bf16.msra.mxu1 %v686_v25 }
  0x4f   :  { %283 = vmatprep.subr.bf16.mxu0 %v687_v26  ;;  %627 = vmatprep.subr.bf16.mxu1 %v687_v26 }
  0x52   :  { %284 = vmatpush1.bf16.msra.mxu0 %v689_v27  ;;  %643 = vmatpush1.bf16.msra.mxu1 %v689_v27 }
  0x53   :  { %285 = vmatprep.subr.bf16.mxu0 %v690_v28  ;;  %628 = vmatprep.subr.bf16.mxu1 %v690_v28 }
  0x56   :  { %286 = vmatpush1.bf16.msra.mxu0 %v692_v29  ;;  %644 = vmatpush1.bf16.msra.mxu1 %v692_v29 }
  0x57   :  { %287 = vmatprep.subr.bf16.mxu0 %v693_v30  ;;  %629 = vmatprep.subr.bf16.mxu1 %v693_v30 }
  0x5a   :  { %288 = vmatpush1.bf16.msra.mxu0 %v695_v31  ;;  %645 = vmatpush1.bf16.msra.mxu1 %v695_v31 }
  0x5b   :  { %289 = vmatprep.subr.bf16.mxu0 %v696_v32  ;;  %630 = vmatprep.subr.bf16.mxu1 %v696_v32 }
  0x5e   :  { %290 = vmatpush1.bf16.msra.mxu0 %v698_v33  ;;  %646 = vmatpush1.bf16.msra.mxu1 %v698_v33 }
  0x5f   :  { %291 = vmatprep.subr.bf16.mxu0 %v699_v34  ;;  %631 = vmatprep.subr.bf16.mxu1 %v699_v34 }
  0x62   :  { %292 = vmatpush1.bf16.msra.mxu0 %v701_v35  ;;  %647 = vmatpush1.bf16.msra.mxu1 %v701_v35 }
  0x63   :  { %293 = vmatprep.subr.bf16.mxu0 %v702_v36  ;;  %632 = vmatprep.subr.bf16.mxu1 %v702_v36 }
  0x66   :  { %294 = vmatpush1.bf16.msra.mxu0 %v704_v37  ;;  %648 = vmatpush1.bf16.msra.mxu1 %v704_v37 }
  0x69   :  { %296 = vmatmul.mubr.bf16.vlgmr.msra.gmra.mrb[0].mxu0 %v63_v46  ;;  %316 = vmatmul.mubr.bf16.vlgmr.msra.gmra.mrb[0].mxu1 %v67_v47 }
  0x6a   :  { %305 = vmatprep.mubr.bf16.mxu0 %v66_v48  ;;  %325 = vmatprep.mubr.bf16.mxu1 %v70_v49 }
  0x71   :  { %306 = vmatmul.mubr.bf16.gmra.mrb[4].mxu0 %v65_v54  ;;  %326 = vmatmul.mubr.bf16.gmra.mrb[4].mxu1 %v69_v55 }
 0x13c   :  { %v297_v62 = vpop.f32.mrb[0].mxu0  ;;  %v317_v63 = vpop.f32.mrb[0].mxu1 }
 0x13d   :  { %v437_v0 = vsel %vm413_vm0, %v297_v62, 0.0  ;;  %v299_v1 = vpop.f32.mrb[1].mxu0  ;;  %v319_v2 = vpop.f32.mrb[1].mxu1  ;;  %v445_v23 = vsel %vm417_vm2, %v317_v63, 0.0 }
 0x13e   :  { %v609_v4 = vpack.c.bf16 %v299_v1, %v297_v62  ;;  %v438_v5 = vsel %vm413_vm0, %v299_v1, 0.0  ;;  %v301_v6 = vpop.f32.mrb[2].mxu0  ;;  %v321_v7 = vpop.f32.mrb[2].mxu1  ;;  %v479_v10 = vmul.f32 %v437_v0, %v437_v0  ;;  %v613_v13 = vpack.c.bf16 %v319_v2, %v317_v63 }
 0x13f   :  { %v439_v11 = vsel %vm414_vm1, %v301_v6, 0.0  ;;  %v303_v12 = vpop.f32.mrb[3].mxu0  ;;  %v323_v14 = vpop.f32.mrb[3].mxu1  ;;  %v480_v20 = vmul.f32 %v438_v5, %v438_v5  ;;  %v446_v25 = vsel %vm417_vm2, %v319_v2, 0.0  ;;  %v487_v28 = vmul.f32 %v445_v23, %v445_v23 }
 0x140   :  { %384 = vst [vmem:[#allocation8] sm:$0xff] %v609_v4  ;;  %v453_v16 = vadd.f32 %v439_v11, %v437_v0  ;;  %v481_v17 = vmul.f32 %v439_v11, %v439_v11  ;;  %v610_v18 = vpack.c.bf16 %v303_v12, %v301_v6  ;;  %v440_v19 = vsel %vm414_vm1, %v303_v12, 0.0  ;;  %388 = vst [vmem:[#allocation8 + $0x20] sm:$0xff] %v613_v13 }
 0x141   :  { %v466_v21 = vadd.f32 %v440_v19, %v438_v5  ;;  %v482_v22 = vmul.f32 %v440_v19, %v440_v19  ;;  %v614_v26 = vpack.c.bf16 %v323_v14, %v321_v7  ;;  %v488_v31 = vmul.f32 %v446_v25, %v446_v25 }
 0x142   :  { %v495_v24 = vadd.f32 %v481_v17, %v479_v10  ;;  %385 = vst [vmem:[#allocation8 + $0x8] sm:$0xff] %v610_v18  ;;  %v447_v32 = vsel %vm418_vm3, %v321_v7, 0.0  ;;  %v448_v34 = vsel %vm418_vm3, %v323_v14, 0.0 }
 0x143   :  { %v508_v27 = vadd.f32 %v482_v22, %v480_v20  ;;  %389 = vst [vmem:[#allocation8 + $0x28] sm:$0xff] %v614_v26  ;;  %v489_v62 = vmul.f32 %v447_v32, %v447_v32  ;;  %v490_v2 = vmul.f32 %v448_v34, %v448_v34 }
 0x144   :  { %v307_v29 = vpop.f32.mrb[4].mxu0  ;;  %v327_v30 = vpop.f32.mrb[4].mxu1 }
 0x145   :  { %v441_v33 = vsel %vm415_vm4, %v307_v29, 0.0  ;;  %v309_v35 = vpop.f32.mrb[5].mxu0  ;;  %v329_v36 = vpop.f32.mrb[5].mxu1  ;;  %v449_v47 = vsel %vm419_vm6, %v327_v30, 0.0 }
 0x146   :  { %v454_v37 = vadd.f32 %v453_v16, %v441_v33  ;;  %v483_v38 = vmul.f32 %v441_v33, %v441_v33  ;;  %v611_v39 = vpack.c.bf16 %v309_v35, %v307_v29  ;;  %v442_v40 = vsel %vm415_vm4, %v309_v35, 0.0  ;;  %v311_v41 = vpop.f32.mrb[6].mxu0  ;;  %v331_v42 = vpop.f32.mrb[6].mxu1 }
 0x147   :  { %v467_v43 = vadd.f32 %v466_v21, %v442_v40  ;;  %v484_v44 = vmul.f32 %v442_v40, %v442_v40  ;;  %v313_v45 = vpop.f32.mrb[7].mxu0  ;;  %v443_v46 = vsel %vm416_vm5, %v311_v41, 0.0  ;;  %v333_v48 = vpop.f32.mrb[7].mxu1  ;;  %v615_v59 = vpack.c.bf16 %v329_v36, %v327_v30 }
 0x148   :  { %v496_v49 = vadd.f32 %v495_v24, %v483_v38  ;;  %386 = vst [vmem:[#allocation8 + $0x10] sm:$0xff] %v611_v39  ;;  %v612_v50 = vpack.c.bf16 %v313_v45, %v311_v41  ;;  %v444_v51 = vsel %vm416_vm5, %v313_v45, 0.0  ;;  %v455_v52 = vadd.f32 %v454_v37, %v443_v46 }
 0x149   :  { %v509_v53 = vadd.f32 %v508_v27, %v484_v44  ;;  %v468_v54 = vadd.f32 %v467_v43, %v444_v51  ;;  %v485_v55 = vmul.f32 %v443_v46, %v443_v46  ;;  %v486_v56 = vmul.f32 %v444_v51, %v444_v51  ;;  %390 = vst [vmem:[#allocation8 + $0x30] sm:$0xff] %v615_v59 }
 0x14a   :  { %387 = vst [vmem:[#allocation8 + $0x18] sm:$0xff] %v612_v50  ;;  %v456_v57 = vadd.f32 %v455_v52, %v445_v23  ;;  %v450_v60 = vsel %vm419_vm6, %v329_v36, 0.0  ;;  %v616_v61 = vpack.c.bf16 %v333_v48, %v331_v42  ;;  %v491_v4 = vmul.f32 %v449_v47, %v449_v47 }
 0x14b   :  { %v469_v63 = vadd.f32 %v468_v54, %v446_v25  ;;  %v497_v0 = vadd.f32 %v496_v49, %v485_v55  ;;  %v510_v1 = vadd.f32 %v509_v53, %v486_v56  ;;  %v492_v5 = vmul.f32 %v450_v60, %v450_v60 }
 0x14c   :  { %v457_v3 = vadd.f32 %v456_v57, %v447_v32  ;;  %391 = vst [vmem:[#allocation8 + $0x38] sm:$0xff] %v616_v61  ;;  %v451_v9 = vsel %vm420_vm7, %v331_v42, 0.0 }
 0x14d   :  { %v498_v6 = vadd.f32 %v497_v0, %v487_v28  ;;  %v511_v7 = vadd.f32 %v510_v1, %v488_v31  ;;  %v470_v8 = vadd.f32 %v469_v63, %v448_v34 }
 0x14e   :  { %760 = shalt.err (!%p757_p6)
}
 0x14f   :  { %s761_s21 = scalar_lea.hbm %s949_s3, 1024 }
 0x150   :  { %p762_p7 = scmp.ne.s32.totalorder %s949_s3, %s761_s21  ;;  %p765_p8 = scmp.lt.u32.totalorder %s761_s21, %s949_s3 }
 0x152   :  { %p767_p9 = pnand %p765_p8, %p762_p7 }
 0x154   :  { %770 = shalt.err (!%p767_p9)
}
 0x155   :  { %547 = dma.vmem_to_hbm [thread:$0]  %s906_s17, 1024, %s949_s3, [#allocation5], %s805_s1, %s805_s1, %s806_s13   ;;  %v458_v10 = vadd.f32 %v457_v3, %v449_v47  ;;  %v452_v11 = vsel %vm420_vm7, %v333_v48, 0.0  ;;  %v499_v12 = vadd.f32 %v498_v6, %v489_v62  ;;  %v471_v13 = vadd.f32 %v470_v8, %v450_v60 }
 0x156   :  { %v512_v14 = vadd.f32 %v511_v7, %v490_v2  ;;  %v493_v17 = vmul.f32 %v451_v9, %v451_v9  ;;  %v494_v21 = vmul.f32 %v452_v11, %v452_v11  ;;  %vm521_vm8 = vcmask 1040384   ;;  %s808_s3 = smov [#allocation9]  }
 0x157   :  { %v459_v16 = vadd.f32 %v458_v10, %v451_v9  ;;  %v500_v18 = vadd.f32 %v499_v12, %v491_v4  ;;  %v472_v20 = vadd.f32 %v471_v13, %v452_v11  ;;  %s554_s28 = sshll.u32 %s808_s3, 4  ;;  %s555_s28 = int_to_ptr.vmem [resolvable:$true] %s554_s28 }
 0x158   :  { %v513_v19 = vadd.f32 %v512_v14, %v492_v5  ;;  %s771_s29 = scalar_lea.vmem %s555_s28, 64  ;;  %p776_p11 = scmp.lt.s32.totalorder %s555_s28, %s555_s28 }
 0x159   :  { %v460_v22 = vrot.slane %v459_v16, 4  ;;  %v473_v23 = vrot.slane %v472_v20, 4  ;;  %v501_v24 = vadd.f32 %v500_v18, %v493_v17  ;;  %p772_p10 = scmp.ne.s32.totalorder %s555_s28, %s771_s29  ;;  %p777_p12 = scmp.lt.s32.totalorder %s771_s29, %s771_s29 }
 0x15a   :  { %v514_v25 = vadd.f32 %v513_v19, %v494_v21 }
 0x15b   :  { %v461_v26 = vadd.f32 %v460_v22, %v459_v16  ;;  %v474_v27 = vadd.f32 %v473_v23, %v472_v20  ;;  %v502_v28 = vrot.slane %v501_v24, 4  ;;  %p778_p13 = por %p777_p12, %p776_p11 }
 0x15c   :  { %v515_v29 = vrot.slane %v514_v25, 4 }
 0x15d   :  { %v462_v30 = vrot.slane %v461_v26, 2  ;;  %v475_v58 = vrot.slane %v474_v27, 2  ;;  %v503_v15 = vadd.f32 %v502_v28, %v501_v24  ;;  %p779_p0 = pnand %p778_p13, %p772_p10 }
 0x15e   :  { %v516_v31 = vadd.f32 %v515_v29, %v514_v25 }
 0x15f   :  { %v463_v32 = vadd.f32 %v462_v30, %v461_v26  ;;  %v476_v33 = vadd.f32 %v475_v58, %v474_v27  ;;  %v504_v34 = vrot.slane %v503_v15, 2 }
 0x160   :  { %v517_v35 = vrot.slane %v516_v31, 2 }
 0x161   :  { %v464_v36 = vrot.slane %v463_v32, 1  ;;  %v477_v37 = vrot.slane %v476_v33, 1  ;;  %v505_v38 = vadd.f32 %v504_v34, %v503_v15 }
 0x162   :  { %v518_v39 = vadd.f32 %v517_v35, %v516_v31 }
 0x163   :  { %v506_v41 = vrot.slane %v505_v38, 1  ;;  %v478_v42 = vadd.f32 %v477_v37, %v476_v33  ;;  %v465_v43 = vadd.f32 %v464_v36, %v463_v32 }
 0x164   :  { %v519_v40 = vrot.slane %v518_v39, 1 }
 0x165   :  { %v507_v44 = vadd.f32 %v506_v41, %v505_v38 }
 0x166   :  { %v520_v45 = vadd.f32 %v519_v40, %v518_v39 }
 0x167   :  { %v522_v46 = vsel %vm521_vm8, %v465_v43, %v507_v44 }
 0x168   :  { %v523_v47 = vsel %vm521_vm8, %v478_v42, %v520_v45 }
 0x169   :  { %v526_v48 = vcombine.low %v522_v46, %v523_v47 }
 0x16b   :  { %608 = vst.sshfl [vmem:[#allocation9] sm:$0x33 pattern:$0x76325410] %v526_v48 }
 0x16c   :  { %782 = shalt.err (!%p779_p0)
}
 0x16d   :  { %s783_s6 = scalar_lea.hbm %s950_s4, 64 }
 0x16e   :  { %p784_p1 = scmp.ne.s32.totalorder %s950_s4, %s783_s6  ;;  %p787_p2 = scmp.lt.u32.totalorder %s783_s6, %s950_s4 }
 0x170   :  { %p789_p3 = pnand %p787_p2, %p784_p1 }
 0x172   :  { %792 = shalt.err (!%p789_p3)
}
 0x173   :  { %557 = dma.vmem_to_hbm [thread:$0]  %s555_s28, 64, %s950_s4, [#allocation10]  }
 0x174   :  { %797 = dma.done.wait [#allocation5], 1024  }
 0x175   :  { %798 = vsyncadd [#allocation5], 4294966272 }
 0x176   :  { %799 = dma.done.wait [#allocation10], 64  }
 0x177   :  { %800 = vsyncadd [#allocation10], 4294967232 }
 0x178   :  { %564 = vsyncpa [#allocation4], 1 }
 0x179   :  { %565 = vsyncpa [#allocation7], 1 }
 0x17a   :  { %566 = vsyncpa [#allocation5], 1 }
 0x17b   :  { %567 = vsyncpa [#allocation10], 1 }

// kernel: tpu_custom_call.1
= control target key start
LH: loop header
LB: loop body
LE: loop exit
PB: predicated region body
PF: predicated region fallthrough
CT: control target
= control target key end

     0   :  { %11 = vsyncpa [#allocation4], 0  ;;  %s946_s0 = inlined_call_operand.<no memory space> [shape: s32[1], index: 0, kind: input, shape index: {}]   ;;  %s947_s1 = inlined_call_operand.hbm [shape: f32[64,256], index: 1, kind: input, shape index: {}]   ;;  %s948_s2 = inlined_call_operand.hbm [shape: bf16[256,256], index: 2, kind: input, shape index: {}]   ;;  %s949_s3 = inlined_call_operand.hbm [shape: bf16[64,256], index: 3, kind: output, shape index: {0}]   ;;  %s950_s4 = inlined_call_operand.hbm [shape: f32[1,2,256], index: 4, kind: output, shape index: {1}]  }
   0x1   :  { %12 = vsyncpa [#allocation7], 0 }
   0x2   :  { %13 = vsyncpa [#allocation5], 0 }
   0x3   :  { %14 = vsyncpa [#allocation10], 0  ;;  %s801_s15 = smov [#allocation3]   ;;  %s705_s19 = scalar_lea.hbm %s947_s1, 2048 }
   0x4   :  { %s22_s16 = sshll.u32 %s801_s15, 4  ;;  %p706_p0 = scmp.ne.s32.totalorder %s947_s1, %s705_s19  ;;  %s23_s16 = int_to_ptr.vmem [resolvable:$true] %s22_s16 }
   0x5   :  { %p709_p1 = scmp.lt.u32.totalorder %s705_s19, %s947_s1 }
   0x7   :  { %p711_p2 = pnand %p709_p1, %p706_p0 }
   0x9   :  { %714 = shalt.err (!%p711_p2)
}
   0xa   :  { %s715_s24 = scalar_lea.vmem %s23_s16, 2048  ;;  %p720_p4 = scmp.lt.s32.totalorder %s23_s16, %s23_s16 }
   0xb   :  { %p716_p3 = scmp.ne.s32.totalorder %s23_s16, %s715_s24  ;;  %p721_p5 = scmp.lt.s32.totalorder %s715_s24, %s715_s24 }
   0xd   :  { %p722_p6 = por %p721_p5, %p720_p4 }
   0xf   :  { %p723_p7 = pnand %p722_p6, %p716_p3 }
  0x11   :  { %726 = shalt.err (!%p723_p7)
}
  0x12   :  { %s802_s25 = smov 256   ;;  %s803_s26 = smov 16  }
  0x13   :  { %28 = dma.hbm_to_vmem [thread:$0]  %s947_s1, 2048, %s23_s16, [#allocation4], %s802_s25, %s802_s25, %s803_s26  }
  0x14   :  { %s804_s29 = smov [#allocation6]   ;;  %s727_s7 = scalar_lea.hbm %s948_s2, 4096 }
  0x15   :  { %s34_s30 = sshll.u32 %s804_s29, 4  ;;  %p728_p8 = scmp.ne.s32.totalorder %s948_s2, %s727_s7  ;;  %s35_s30 = int_to_ptr.vmem [resolvable:$true] %s34_s30 }
  0x16   :  { %p731_p9 = scmp.lt.u32.totalorder %s727_s7, %s948_s2 }
  0x18   :  { %p733_p10 = pnand %p731_p9, %p728_p8 }
  0x1a   :  { %736 = shalt.err (!%p733_p10)
}
  0x1b   :  { %s737_s12 = scalar_lea.vmem %s35_s30, 4096  ;;  %p742_p12 = scmp.lt.s32.totalorder %s35_s30, %s35_s30 }
  0x1c   :  { %p738_p11 = scmp.ne.s32.totalorder %s35_s30, %s737_s12  ;;  %p743_p13 = scmp.lt.s32.totalorder %s737_s12, %s737_s12 }
  0x1e   :  { %p744_p0 = por %p743_p13, %p742_p12 }
  0x20   :  { %p745_p1 = pnand %p744_p0, %p738_p11 }
  0x22   :  { %748 = shalt.err (!%p745_p1)
}
  0x23   :  { %s805_s1 = smov 128   ;;  %s806_s13 = smov 8  }
  0x24   :  { %40 = dma.hbm_to_vmem [thread:$0]  %s948_s2, 4096, %s35_s30, [#allocation7], %s805_s1, %s805_s1, %s806_s13  }
  0x25   :  { %793 = dma.done.wait [#allocation4], 2048  }
  0x26   :  { %794 = vsyncadd [#allocation4], 4294965248 }
  0x27   :  { %795 = dma.done.wait [#allocation7], 4096  }
  0x28   :  { %796 = vsyncadd [#allocation7], 4294963200  ;;  %v657_v0 = vld [vmem:[#allocation6 + $0x4] ss:$8 sps:$4 sm:$0xff]   ;;  %v659_v1 = vld [vmem:[#allocation6] ss:$8 sps:$4 sm:$0xff]   ;;  %v393_v56 = vlaneseq  ;;  %v864_v58 = vstv %s946_s0 }
  0x29   :  { %263 = vmatprep.subr.bf16.mxu0 %v657_v0  ;;  %v660_v2 = vld [vmem:[#allocation6 + $0x14] ss:$8 sps:$4 sm:$0xff]   ;;  %617 = vmatprep.subr.bf16.mxu1 %v657_v0  ;;  %v662_v3 = vld [vmem:[#allocation6 + $0x10] ss:$8 sps:$4 sm:$0xff]   ;;  %v663_v4 = vld [vmem:[#allocation6 + $0x24] ss:$8 sps:$4 sm:$0xff]  }
  0x2a   :  { %264 = vmatpush1.bf16.msra.mxu0 %v659_v1  ;;  %633 = vmatpush1.bf16.msra.mxu1 %v659_v1  ;;  %v665_v5 = vld [vmem:[#allocation6 + $0x20] ss:$8 sps:$4 sm:$0xff]   ;;  %v666_v6 = vld [vmem:[#allocation6 + $0x34] ss:$8 sps:$4 sm:$0xff]   ;;  %v668_v7 = vld [vmem:[#allocation6 + $0x30] ss:$8 sps:$4 sm:$0xff]  }
  0x2b   :  { %265 = vmatprep.subr.bf16.mxu0 %v660_v2  ;;  %618 = vmatprep.subr.bf16.mxu1 %v660_v2  ;;  %v669_v8 = vld [vmem:[#allocation6 + $0x44] ss:$8 sps:$4 sm:$0xff]   ;;  %v671_v9 = vld [vmem:[#allocation6 + $0x40] ss:$8 sps:$4 sm:$0xff]   ;;  %v672_v10 = vld [vmem:[#allocation6 + $0x54] ss:$8 sps:$4 sm:$0xff]  }
  0x2c   :  { %v674_v11 = vld [vmem:[#allocation6 + $0x50] ss:$8 sps:$4 sm:$0xff]   ;;  %v675_v12 = vld [vmem:[#allocation6 + $0x64] ss:$8 sps:$4 sm:$0xff]   ;;  %v677_v17 = vld [vmem:[#allocation6 + $0x60] ss:$8 sps:$4 sm:$0xff]  }
  0x2d   :  { %v48_v13 = vld [vmem:[#allocation3 + $0x8] sm:$0xff]  ;;  %v50_v14 = vld [vmem:[#allocation3 + $0x18] sm:$0xff]  ;;  %v47_v38 = vld [vmem:[#allocation3] sm:$0xff]  ;;  %v394_v57 = vshrl.u32 %v393_v56, 7  ;;  %s807_s0 = smov [#allocation8]  }
  0x2e   :  { %266 = vmatpush1.bf16.msra.mxu0 %v662_v3  ;;  %634 = vmatpush1.bf16.msra.mxu1 %v662_v3  ;;  %v64_v15 = vpack.c.bf16 %v50_v14, %v48_v13  ;;  %v56_v16 = vld [vmem:[#allocation3 + $0x48] sm:$0xff]  ;;  %v58_v18 = vld [vmem:[#allocation3 + $0x58] sm:$0xff]  ;;  %v49_v39 = vld [vmem:[#allocation3 + $0x10] sm:$0xff]  ;;  %s541_s17 = sshll.u32 %s807_s0, 4  ;;  %s906_s17 = int_to_ptr.vmem [resolvable:$true] %s541_s17 }
  0x2f   :  { %267 = vmatprep.subr.bf16.mxu0 %v663_v4  ;;  %619 = vmatprep.subr.bf16.mxu1 %v663_v4  ;;  %v678_v19 = vld [vmem:[#allocation6 + $0x74] ss:$8 sps:$4 sm:$0xff]   ;;  %v68_v20 = vpack.c.bf16 %v58_v18, %v56_v16  ;;  %v680_v21 = vld [vmem:[#allocation6 + $0x70] ss:$8 sps:$4 sm:$0xff]   ;;  %v681_v22 = vld [vmem:[#allocation6 + $0x84] ss:$8 sps:$4 sm:$0xff]   ;;  %v63_v46 = vpack.c.bf16 %v49_v39, %v47_v38  ;;  %vm413_vm0 = vcmp.lt.s32.totalorder %v394_v57, %v864_v58  ;;  %p754_p3 = scmp.lt.s32.totalorder %s906_s17, %s906_s17 }
  0x30   :  { %295 = vmatprep.mubr.bf16.mxu0 %v64_v15  ;;  %v683_v23 = vld [vmem:[#allocation6 + $0x80] ss:$8 sps:$4 sm:$0xff]   ;;  %v684_v24 = vld [vmem:[#allocation6 + $0x94] ss:$8 sps:$4 sm:$0xff]   ;;  %v686_v25 = vld [vmem:[#allocation6 + $0x90] ss:$8 sps:$4 sm:$0xff]  }
  0x31   :  { %315 = vmatprep.mubr.bf16.mxu1 %v68_v20  ;;  %v687_v26 = vld [vmem:[#allocation6 + $0xa4] ss:$8 sps:$4 sm:$0xff]   ;;  %v689_v27 = vld [vmem:[#allocation6 + $0xa0] ss:$8 sps:$4 sm:$0xff]   ;;  %v690_v28 = vld [vmem:[#allocation6 + $0xb4] ss:$8 sps:$4 sm:$0xff]  }
  0x32   :  { %268 = vmatpush1.bf16.msra.mxu0 %v665_v5  ;;  %635 = vmatpush1.bf16.msra.mxu1 %v665_v5  ;;  %v692_v29 = vld [vmem:[#allocation6 + $0xb0] ss:$8 sps:$4 sm:$0xff]   ;;  %v693_v30 = vld [vmem:[#allocation6 + $0xc4] ss:$8 sps:$4 sm:$0xff]   ;;  %v695_v31 = vld [vmem:[#allocation6 + $0xc0] ss:$8 sps:$4 sm:$0xff]  }
  0x33   :  { %269 = vmatprep.subr.bf16.mxu0 %v666_v6  ;;  %620 = vmatprep.subr.bf16.mxu1 %v666_v6  ;;  %v696_v32 = vld [vmem:[#allocation6 + $0xd4] ss:$8 sps:$4 sm:$0xff]   ;;  %v698_v33 = vld [vmem:[#allocation6 + $0xd0] ss:$8 sps:$4 sm:$0xff]   ;;  %v699_v34 = vld [vmem:[#allocation6 + $0xe4] ss:$8 sps:$4 sm:$0xff]  }
  0x34   :  { %v701_v35 = vld [vmem:[#allocation6 + $0xe0] ss:$8 sps:$4 sm:$0xff]   ;;  %v702_v36 = vld [vmem:[#allocation6 + $0xf4] ss:$8 sps:$4 sm:$0xff]   ;;  %v704_v37 = vld [vmem:[#allocation6 + $0xf0] ss:$8 sps:$4 sm:$0xff]  }
  0x35   :  { %v55_v40 = vld [vmem:[#allocation3 + $0x40] sm:$0xff]  ;;  %v57_v41 = vld [vmem:[#allocation3 + $0x50] sm:$0xff]  ;;  %v52_v42 = vld [vmem:[#allocation3 + $0x28] sm:$0xff]  ;;  %v395_v59 = vadd.s32 8, %v394_v57  ;;  %v398_v60 = vadd.s32 32, %v394_v57  ;;  %v399_v61 = vadd.s32 40, %v394_v57 }
  0x36   :  { %270 = vmatpush1.bf16.msra.mxu0 %v668_v7  ;;  %636 = vmatpush1.bf16.msra.mxu1 %v668_v7  ;;  %v54_v43 = vld [vmem:[#allocation3 + $0x38] sm:$0xff]  ;;  %v60_v44 = vld [vmem:[#allocation3 + $0x68] sm:$0xff]  ;;  %v67_v47 = vpack.c.bf16 %v57_v41, %v55_v40  ;;  %v51_v50 = vld [vmem:[#allocation3 + $0x20] sm:$0xff]  ;;  %v396_v3 = vadd.s32 16, %v394_v57  ;;  %v874_v15 = vadd.s32 56, %v394_v57  ;;  %s749_s18 = scalar_lea.vmem %s906_s17, 1024 }
  0x37   :  { %271 = vmatprep.subr.bf16.mxu0 %v669_v8  ;;  %621 = vmatprep.subr.bf16.mxu1 %v669_v8  ;;  %v62_v45 = vld [vmem:[#allocation3 + $0x78] sm:$0xff]  ;;  %v66_v48 = vpack.c.bf16 %v54_v43, %v52_v42  ;;  %v53_v51 = vld [vmem:[#allocation3 + $0x30] sm:$0xff]  ;;  %v59_v52 = vld [vmem:[#allocation3 + $0x60] sm:$0xff]  ;;  %vm414_vm1 = vcmp.lt.s32.totalorder %v395_v59, %v864_v58  ;;  %vm417_vm2 = vcmp.lt.s32.totalorder %v398_v60, %v864_v58  ;;  %v397_v8 = vadd.s32 24, %v394_v57  ;;  %p750_p2 = scmp.ne.s32.totalorder %s906_s17, %s749_s18  ;;  %p755_p4 = scmp.lt.s32.totalorder %s749_s18, %s749_s18 }
  0x38   :  { %v70_v49 = vpack.c.bf16 %v62_v45, %v60_v44  ;;  %v61_v53 = vld [vmem:[#allocation3 + $0x70] sm:$0xff]  ;;  %v65_v54 = vpack.c.bf16 %v53_v51, %v51_v50  ;;  %vm418_vm3 = vcmp.lt.s32.totalorder %v399_v61, %v864_v58  ;;  %vm415_vm4 = vcmp.lt.s32.totalorder %v396_v3, %v864_v58 }
  0x39   :  { %v69_v55 = vpack.c.bf16 %v61_v53, %v59_v52  ;;  %vm416_vm5 = vcmp.lt.s32.totalorder %v397_v8, %v864_v58  ;;  %vm420_vm7 = vcmp.lt.s32.totalorder %v874_v15, %v864_v58  ;;  %p756_p5 = por %p755_p4, %p754_p3 }
  0x3a   :  { %272 = vmatpush1.bf16.msra.mxu0 %v671_v9  ;;  %637 = vmatpush1.bf16.msra.mxu1 %v671_v9  ;;  %v870_v9 = vadd.s32 48, %v394_v57 }
  0x3b   :  { %273 = vmatprep.subr.bf16.mxu0 %v672_v10  ;;  %622 = vmatprep.subr.bf16.mxu1 %v672_v10  ;;  %p757_p6 = pnand %p756_p5, %p750_p2 }
  0x3c   :  { %vm419_vm6 = vcmp.lt.s32.totalorder %v870_v9, %v864_v58 }
  0x3e   :  { %274 = vmatpush1.bf16.msra.mxu0 %v674_v11  ;;  %638 = vmatpush1.bf16.msra.mxu1 %v674_v11 }
  0x3f   :  { %275 = vmatprep.subr.bf16.mxu0 %v675_v12  ;;  %623 = vmatprep.subr.bf16.mxu1 %v675_v12 }
  0x42   :  { %276 = vmatpush1.bf16.msra.mxu0 %v677_v17  ;;  %639 = vmatpush1.bf16.msra.mxu1 %v677_v17 }
  0x43   :  { %277 = vmatprep.subr.bf16.mxu0 %v678_v19  ;;  %624 = vmatprep.subr.bf16.mxu1 %v678_v19 }
  0x46   :  { %278 = vmatpush1.bf16.msra.mxu0 %v680_v21  ;;  %640 = vmatpush1.bf16.msra.mxu1 %v680_v21 }
  0x47   :  { %279 = vmatprep.subr.bf16.mxu0 %v681_v22  ;;  %625 = vmatprep.subr.bf16.mxu1 %v681_v22 }
  0x4a   :  { %280 = vmatpush1.bf16.msra.mxu0 %v683_v23  ;;  %641 = vmatpush1.bf16.msra.mxu1 %v683_v23 }
  0x4b   :  { %281 = vmatprep.subr.bf16.mxu0 %v684_v24  ;;  %626 = vmatprep.subr.bf16.mxu1 %v684_v24 }
  0x4e   :  { %282 = vmatpush1.bf16.msra.mxu0 %v686_v25  ;;  %642 = vmatpush1.bf16.msra.mxu1 %v686_v25 }
  0x4f   :  { %283 = vmatprep.subr.bf16.mxu0 %v687_v26  ;;  %627 = vmatprep.subr.bf16.mxu1 %v687_v26 }
  0x52   :  { %284 = vmatpush1.bf16.msra.mxu0 %v689_v27  ;;  %643 = vmatpush1.bf16.msra.mxu1 %v689_v27 }
  0x53   :  { %285 = vmatprep.subr.bf16.mxu0 %v690_v28  ;;  %628 = vmatprep.subr.bf16.mxu1 %v690_v28 }
  0x56   :  { %286 = vmatpush1.bf16.msra.mxu0 %v692_v29  ;;  %644 = vmatpush1.bf16.msra.mxu1 %v692_v29 }
  0x57   :  { %287 = vmatprep.subr.bf16.mxu0 %v693_v30  ;;  %629 = vmatprep.subr.bf16.mxu1 %v693_v30 }
  0x5a   :  { %288 = vmatpush1.bf16.msra.mxu0 %v695_v31  ;;  %645 = vmatpush1.bf16.msra.mxu1 %v695_v31 }
  0x5b   :  { %289 = vmatprep.subr.bf16.mxu0 %v696_v32  ;;  %630 = vmatprep.subr.bf16.mxu1 %v696_v32 }
  0x5e   :  { %290 = vmatpush1.bf16.msra.mxu0 %v698_v33  ;;  %646 = vmatpush1.bf16.msra.mxu1 %v698_v33 }
  0x5f   :  { %291 = vmatprep.subr.bf16.mxu0 %v699_v34  ;;  %631 = vmatprep.subr.bf16.mxu1 %v699_v34 }
  0x62   :  { %292 = vmatpush1.bf16.msra.mxu0 %v701_v35  ;;  %647 = vmatpush1.bf16.msra.mxu1 %v701_v35 }
  0x63   :  { %293 = vmatprep.subr.bf16.mxu0 %v702_v36  ;;  %632 = vmatprep.subr.bf16.mxu1 %v702_v36 }
  0x66   :  { %294 = vmatpush1.bf16.msra.mxu0 %v704_v37  ;;  %648 = vmatpush1.bf16.msra.mxu1 %v704_v37 }
  0x69   :  { %296 = vmatmul.mubr.bf16.vlgmr.msra.gmra.mrb[0].mxu0 %v63_v46  ;;  %316 = vmatmul.mubr.bf16.vlgmr.msra.gmra.mrb[0].mxu1 %v67_v47 }
  0x6a   :  { %305 = vmatprep.mubr.bf16.mxu0 %v66_v48  ;;  %325 = vmatprep.mubr.bf16.mxu1 %v70_v49 }
  0x71   :  { %306 = vmatmul.mubr.bf16.gmra.mrb[4].mxu0 %v65_v54  ;;  %326 = vmatmul.mubr.bf16.gmra.mrb[4].mxu1 %v69_v55 }
 0x13c   :  { %v297_v62 = vpop.f32.mrb[0].mxu0  ;;  %v317_v63 = vpop.f32.mrb[0].mxu1 }
 0x13d   :  { %v437_v0 = vsel %vm413_vm0, %v297_v62, 0.0  ;;  %v299_v1 = vpop.f32.mrb[1].mxu0  ;;  %v319_v2 = vpop.f32.mrb[1].mxu1  ;;  %v445_v23 = vsel %vm417_vm2, %v317_v63, 0.0 }
 0x13e   :  { %v609_v4 = vpack.c.bf16 %v299_v1, %v297_v62  ;;  %v438_v5 = vsel %vm413_vm0, %v299_v1, 0.0  ;;  %v301_v6 = vpop.f32.mrb[2].mxu0  ;;  %v321_v7 = vpop.f32.mrb[2].mxu1  ;;  %v479_v10 = vmul.f32 %v437_v0, %v437_v0  ;;  %v613_v13 = vpack.c.bf16 %v319_v2, %v317_v63 }
 0x13f   :  { %v439_v11 = vsel %vm414_vm1, %v301_v6, 0.0  ;;  %v303_v12 = vpop.f32.mrb[3].mxu0  ;;  %v323_v14 = vpop.f32.mrb[3].mxu1  ;;  %v480_v20 = vmul.f32 %v438_v5, %v438_v5  ;;  %v446_v25 = vsel %vm417_vm2, %v319_v2, 0.0  ;;  %v487_v28 = vmul.f32 %v445_v23, %v445_v23 }
 0x140   :  { %384 = vst [vmem:[#allocation8] sm:$0xff] %v609_v4  ;;  %v453_v16 = vadd.f32 %v439_v11, %v437_v0  ;;  %v481_v17 = vmul.f32 %v439_v11, %v439_v11  ;;  %v610_v18 = vpack.c.bf16 %v303_v12, %v301_v6  ;;  %v440_v19 = vsel %vm414_vm1, %v303_v12, 0.0  ;;  %388 = vst [vmem:[#allocation8 + $0x20] sm:$0xff] %v613_v13 }
 0x141   :  { %v466_v21 = vadd.f32 %v440_v19, %v438_v5  ;;  %v482_v22 = vmul.f32 %v440_v19, %v440_v19  ;;  %v614_v26 = vpack.c.bf16 %v323_v14, %v321_v7  ;;  %v488_v31 = vmul.f32 %v446_v25, %v446_v25 }
 0x142   :  { %v495_v24 = vadd.f32 %v481_v17, %v479_v10  ;;  %385 = vst [vmem:[#allocation8 + $0x8] sm:$0xff] %v610_v18  ;;  %v447_v32 = vsel %vm418_vm3, %v321_v7, 0.0  ;;  %v448_v34 = vsel %vm418_vm3, %v323_v14, 0.0 }
 0x143   :  { %v508_v27 = vadd.f32 %v482_v22, %v480_v20  ;;  %389 = vst [vmem:[#allocation8 + $0x28] sm:$0xff] %v614_v26  ;;  %v489_v62 = vmul.f32 %v447_v32, %v447_v32  ;;  %v490_v2 = vmul.f32 %v448_v34, %v448_v34 }
 0x144   :  { %v307_v29 = vpop.f32.mrb[4].mxu0  ;;  %v327_v30 = vpop.f32.mrb[4].mxu1 }
 0x145   :  { %v441_v33 = vsel %vm415_vm4, %v307_v29, 0.0  ;;  %v309_v35 = vpop.f32.mrb[5].mxu0  ;;  %v329_v36 = vpop.f32.mrb[5].mxu1  ;;  %v449_v47 = vsel %vm419_vm6, %v327_v30, 0.0 }
 0x146   :  { %v454_v37 = vadd.f32 %v453_v16, %v441_v33  ;;  %v483_v38 = vmul.f32 %v441_v33, %v441_v33  ;;  %v611_v39 = vpack.c.bf16 %v309_v35, %v307_v29  ;;  %v442_v40 = vsel %vm415_vm4, %v309_v35, 0.0  ;;  %v311_v41 = vpop.f32.mrb[6].mxu0  ;;  %v331_v42 = vpop.f32.mrb[6].mxu1 }
 0x147   :  { %v467_v43 = vadd.f32 %v466_v21, %v442_v40  ;;  %v484_v44 = vmul.f32 %v442_v40, %v442_v40  ;;  %v313_v45 = vpop.f32.mrb[7].mxu0  ;;  %v443_v46 = vsel %vm416_vm5, %v311_v41, 0.0  ;;  %v333_v48 = vpop.f32.mrb[7].mxu1  ;;  %v615_v59 = vpack.c.bf16 %v329_v36, %v327_v30 }
 0x148   :  { %v496_v49 = vadd.f32 %v495_v24, %v483_v38  ;;  %386 = vst [vmem:[#allocation8 + $0x10] sm:$0xff] %v611_v39  ;;  %v612_v50 = vpack.c.bf16 %v313_v45, %v311_v41  ;;  %v444_v51 = vsel %vm416_vm5, %v313_v45, 0.0  ;;  %v455_v52 = vadd.f32 %v454_v37, %v443_v46 }
 0x149   :  { %v509_v53 = vadd.f32 %v508_v27, %v484_v44  ;;  %v468_v54 = vadd.f32 %v467_v43, %v444_v51  ;;  %v485_v55 = vmul.f32 %v443_v46, %v443_v46  ;;  %v486_v56 = vmul.f32 %v444_v51, %v444_v51  ;;  %390 = vst [vmem:[#allocation8 + $0x30] sm:$0xff] %v615_v59 }
 0x14a   :  { %387 = vst [vmem:[#allocation8 + $0x18] sm:$0xff] %v612_v50  ;;  %v456_v57 = vadd.f32 %v455_v52, %v445_v23  ;;  %v450_v60 = vsel %vm419_vm6, %v329_v36, 0.0  ;;  %v616_v61 = vpack.c.bf16 %v333_v48, %v331_v42  ;;  %v491_v4 = vmul.f32 %v449_v47, %v449_v47 }
 0x14b   :  { %v469_v63 = vadd.f32 %v468_v54, %v446_v25  ;;  %v497_v0 = vadd.f32 %v496_v49, %v485_v55  ;;  %v510_v1 = vadd.f32 %v509_v53, %v486_v56  ;;  %v492_v5 = vmul.f32 %v450_v60, %v450_v60 }
 0x14c   :  { %v457_v3 = vadd.f32 %v456_v57, %v447_v32  ;;  %391 = vst [vmem:[#allocation8 + $0x38] sm:$0xff] %v616_v61  ;;  %v451_v9 = vsel %vm420_vm7, %v331_v42, 0.0 }
 0x14d   :  { %v498_v6 = vadd.f32 %v497_v0, %v487_v28  ;;  %v511_v7 = vadd.f32 %v510_v1, %v488_v31  ;;  %v470_v8 = vadd.f32 %v469_v63, %v448_v34 }
 0x14e   :  { %760 = shalt.err (!%p757_p6)
}
 0x14f   :  { %s761_s21 = scalar_lea.hbm %s949_s3, 1024 }
 0x150   :  { %p762_p7 = scmp.ne.s32.totalorder %s949_s3, %s761_s21  ;;  %p765_p8 = scmp.lt.u32.totalorder %s761_s21, %s949_s3 }
 0x152   :  { %p767_p9 = pnand %p765_p8, %p762_p7 }
 0x154   :  { %770 = shalt.err (!%p767_p9)
}
 0x155   :  { %547 = dma.vmem_to_hbm [thread:$0]  %s906_s17, 1024, %s949_s3, [#allocation5], %s805_s1, %s805_s1, %s806_s13   ;;  %v458_v10 = vadd.f32 %v457_v3, %v449_v47  ;;  %v452_v11 = vsel %vm420_vm7, %v333_v48, 0.0  ;;  %v499_v12 = vadd.f32 %v498_v6, %v489_v62  ;;  %v471_v13 = vadd.f32 %v470_v8, %v450_v60 }
 0x156   :  { %v512_v14 = vadd.f32 %v511_v7, %v490_v2  ;;  %v493_v17 = vmul.f32 %v451_v9, %v451_v9  ;;  %v494_v21 = vmul.f32 %v452_v11, %v452_v11  ;;  %vm521_vm8 = vcmask 1040384   ;;  %s808_s3 = smov [#allocation9]  }
 0x157   :  { %v459_v16 = vadd.f32 %v458_v10, %v451_v9  ;;  %v500_v18 = vadd.f32 %v499_v12, %v491_v4  ;;  %v472_v20 = vadd.f32 %v471_v13, %v452_v11  ;;  %s554_s28 = sshll.u32 %s808_s3, 4  ;;  %s555_s28 = int_to_ptr.vmem [resolvable:$true] %s554_s28 }
 0x158   :  { %v513_v19 = vadd.f32 %v512_v14, %v492_v5  ;;  %s771_s29 = scalar_lea.vmem %s555_s28, 64  ;;  %p776_p11 = scmp.lt.s32.totalorder %s555_s28, %s555_s28 }
 0x159   :  { %v460_v22 = vrot.slane %v459_v16, 4  ;;  %v473_v23 = vrot.slane %v472_v20, 4  ;;  %v501_v24 = vadd.f32 %v500_v18, %v493_v17  ;;  %p772_p10 = scmp.ne.s32.totalorder %s555_s28, %s771_s29  ;;  %p777_p12 = scmp.lt.s32.totalorder %s771_s29, %s771_s29 }
 0x15a   :  { %v514_v25 = vadd.f32 %v513_v19, %v494_v21 }
 0x15b   :  { %v461_v26 = vadd.f32 %v460_v22, %v459_v16  ;;  %v474_v27 = vadd.f32 %v473_v23, %v472_v20  ;;  %v502_v28 = vrot.slane %v501_v24, 4  ;;  %p778_p13 = por %p777_p12, %p776_p11 }
 0x15c   :  { %v515_v29 = vrot.slane %v514_v25, 4 }
 0x15d   :  { %v462_v30 = vrot.slane %v461_v26, 2  ;;  %v475_v58 = vrot.slane %v474_v27, 2  ;;  %v503_v15 = vadd.f32 %v502_v28, %v501_v24  ;;  %p779_p0 = pnand %p778_p13, %p772_p10 }
 0x15e   :  { %v516_v31 = vadd.f32 %v515_v29, %v514_v25 }
 0x15f   :  { %v463_v32 = vadd.f32 %v462_v30, %v461_v26  ;;  %v476_v33 = vadd.f32 %v475_v58, %v474_v27  ;;  %v504_v34 = vrot.slane %v503_v15, 2 }
 0x160   :  { %v517_v35 = vrot.slane %v516_v31, 2 }
 0x161   :  { %v464_v36 = vrot.slane %v463_v32, 1  ;;  %v477_v37 = vrot.slane %v476_v33, 1  ;;  %v505_v38 = vadd.f32 %v504_v34, %v503_v15 }
 0x162   :  { %v518_v39 = vadd.f32 %v517_v35, %v516_v31 }
 0x163   :  { %v506_v41 = vrot.slane %v505_v38, 1  ;;  %v478_v42 = vadd.f32 %v477_v37, %v476_v33  ;;  %v465_v43 = vadd.f32 %v464_v36, %v463_v32 }
 0x164   :  { %v519_v40 = vrot.slane %v518_v39, 1 }
 0x165   :  { %v507_v44 = vadd.f32 %v506_v41, %v505_v38 }
 0x166   :  { %v520_v45 = vadd.f32 %v519_v40, %v518_v39 }
 0x167   :  { %v522_v46 = vsel %vm521_vm8, %v465_v43, %v507_v44 }
 0x168   :  { %v523_v47 = vsel %vm521_vm8, %v478_v42, %v520_v45 }
 0x169   :  { %v526_v48 = vcombine.low %v522_v46, %v523_v47 }
 0x16b   :  { %608 = vst.sshfl [vmem:[#allocation9] sm:$0x33 pattern:$0x76325410] %v526_v48 }
 0x16c   :  { %782 = shalt.err (!%p779_p0)
}
 0x16d   :  { %s783_s6 = scalar_lea.hbm %s950_s4, 64 }
 0x16e   :  { %p784_p1 = scmp.ne.s32.totalorder %s950_s4, %s783_s6  ;;  %p787_p2 = scmp.lt.u32.totalorder %s783_s6, %s950_s4 }
 0x170   :  { %p789_p3 = pnand %p787_p2, %p784_p1 }
 0x172   :  { %792 = shalt.err (!%p789_p3)
}
 0x173   :  { %557 = dma.vmem_to_hbm [thread:$0]  %s555_s28, 64, %s950_s4, [#allocation10]  }
 0x174   :  { %797 = dma.done.wait [#allocation5], 1024  }
 0x175   :  { %798 = vsyncadd [#allocation5], 4294966272 }
 0x176   :  { %799 = dma.done.wait [#allocation10], 64  }
 0x177   :  { %800 = vsyncadd [#allocation10], 4294967232 }
 0x178   :  { %564 = vsyncpa [#allocation4], 1 }
 0x179   :  { %565 = vsyncpa [#allocation7], 1 }
 0x17a   :  { %566 = vsyncpa [#allocation5], 1 }
 0x17b   :  { %567 = vsyncpa [#allocation10], 1 }

</bundles_post_ra>
